<compile_context>
chip_gen: v7x
topology: tpu7x:2x2x1
jax: 0.10.0
libtpu: 0.0.40
codegen_flags: <defaults>
</compile_context>

<pallas_src>
import functools

import jax
import jax.numpy as jnp
from jax.experimental import pallas as pl
from jax.experimental.pallas import tpu as pltpu


def _round_up(x, m):
    return ((x + m - 1) // m) * m


def _pad_to(a, shape):
    pads = [(0, t - s) for s, t in zip(a.shape, shape)]
    if any(p[1] for p in pads):
        return jnp.pad(a, pads)
    return a


def _pick_row_tile(rows_p, target, min_tiles=2, align=16):
    """Largest multiple-of-`align` tile <= target that divides rows_p.  If that
    leaves a single tile and a >=2-tile split is possible, halve it so both
    v7x TensorCores get work on the 'parallel' grid axis."""
    tm = max(align, (min(target, rows_p) // align) * align)
    while rows_p % tm:
        tm -= align
    if rows_p // tm < min_tiles:
        half = (rows_p // min_tiles // align) * align
        if half >= align and rows_p % half == 0:
            tm = half
    return tm


def _vmem_limit(single_copy_block_bytes):
    """Per-kernel VMEM limit: double-buffered blocks + headroom, clamped below
    v7x's 64 MiB physical VMEM (v5e/v6e have 128 MiB, so this is always safe)."""
    need = 2 * int(single_copy_block_bytes)          # double-buffered pipeline
    return int(min(56 * 1024 * 1024, max(32 * 1024 * 1024, 2 * need)))


# ----------------------------------------------------------------------------
# Fused unet_conv1 (1x1) + unet_conv2 (8x8, stride 8)
# ----------------------------------------------------------------------------
def _fused_unet_kernel(x_ref, m_ref, cb_ref, o_ref):
    kh = pl.program_id(1)
    # One MXU matmul per grid step: (tm, 8*C0) @ (8*C0, Hp), f32 accumulate.
    part = jnp.dot(x_ref[...], m_ref[kh], preferred_element_type=jnp.float32)

    @pl.when(kh == 0)
    def _():
        o_ref[...] = part + cb_ref[...]        # init with first dot + bias

    @pl.when(kh != 0)
    def _():
        o_ref[...] = o_ref[...] + part         # accumulate directly in output


def pallas_unet_conv_fused(feat_nchw, w1_raw, b1, w2_raw, b2, *,
                           tm_rows=256, compute_dtype=jnp.bfloat16):
    """Fused unet_conv1(1x1) + unet_conv2(8x8, stride 8).

    feat_nchw: (B, C0, Hh, Ww) with Hh, Ww multiples of 8.
    w1_raw: (H, C0)       (PyTorch Conv2d 1x1 weight, squeezed)
    w2_raw: (H, H, 8, 8)  (PyTorch Conv2d 8x8 weight)
    Returns tokens (oh*ow, B, H) in PyTorch flatten(2).permute(2,0,1) order.
    """
    B, C0, Hh, Ww = feat_nchw.shape
    H = w1_raw.shape[0]
    k = 8
    assert Hh % k == 0 and Ww % k == 0
    oh, ow = Hh // k, Ww // k
    ksub = k * C0            # contraction width per kh; multiple of 128 when
                             # C0 % 16 == 0 (C0 = 320 satisfies it).

    # Pre-compose conv2 o conv1 (both linear) in f32; cast once at the end.
    # TODO(synk): in deployment this folding happens once at weight load.
    m3 = jnp.einsum("ic,nihw->hwcn", w1_raw, w2_raw).reshape(k, ksub, H)
    cbias = b2 + jnp.einsum("i,nihw->n", b1, w2_raw)              # (H,)

    # Lane-pad H to a multiple of 128 so every output store is an unmasked vst.
    Hp = _round_up(H, 128)
    m3 = _pad_to(m3, (k, ksub, Hp)).astype(compute_dtype)
    cb = _pad_to(cbias, (Hp,)).reshape(1, Hp).astype(jnp.float32)

    # ONE fused XLA transpose+cast builds the stride-8 im2col layout directly
    # in bf16: (B, C0, oh, kh, ow, kw) -> (kh, B, oh, ow, kw, C0).  The matmul
    # rows are then (b, oy, ox) and the per-kh x tile is plain 2-D/contiguous.
    x6 = feat_nchw.reshape(B, C0, oh, k, ow, k)
    xg = jnp.transpose(x6, (3, 0, 2, 4, 5, 1)).astype(compute_dtype)
    rows = B * oh * ow
    x3 = xg.reshape(k, rows, ksub)
    rows_p = _round_up(rows, 16)                      # bf16 sublane tile = 16
    x3 = _pad_to(x3, (k, rows_p, ksub))

    tm = _pick_row_tile(rows_p, tm_rows)
    n_tiles = rows_p // tm

    block_bytes = (tm * ksub * 2                      # x tile (bf16)
                   + k * ksub * Hp * 2                # resident composed weight
                   + tm * Hp * 4                      # f32 output tile
                   + Hp * 4)                          # bias
    cost = pl.CostEstimate(
        flops=2 * rows_p * k * ksub * Hp,
        transcendentals=0,
        bytes_accessed=(rows_p * k * ksub + k * ksub * Hp) * 2
        + rows_p * Hp * 4)

    # NOTE: kernel is HBM-bandwidth-bound at production sizes on v6e/v7x;
    # tm_rows=256 keeps the MXU full and the x DMA streaming (could add
    # pipeline_mode=pl.Buffered(3) on the x spec if DMA is still exposed).
    out = pl.pallas_call(
        _fused_unet_kernel,
        out_shape=jax.ShapeDtypeStruct((rows_p, Hp), jnp.float32),
        grid=(n_tiles, k),                            # (row tiles, kh reduce)
        in_specs=[
            # x: kh selected on the (squeezed) leading dim -> 2-D (tm, ksub)
            pl.BlockSpec((None, tm, ksub), lambda i, kh: (kh, i, 0)),
            # composed weight: fully VMEM-resident (constant block index)
            pl.BlockSpec((k, ksub, Hp), lambda i, kh: (0, 0, 0)),
            pl.BlockSpec((1, Hp), lambda i, kh: (0, 0)),
        ],
        out_specs=pl.BlockSpec((tm, Hp), lambda i, kh: (i, 0)),
        compiler_params=pltpu.CompilerParams(
            dimension_semantics=("parallel", "arbitrary"),
            vmem_limit_bytes=_vmem_limit(block_bytes)),
        cost_estimate=cost,
    )(x3, m3, cb)

    out = out[:rows, :H].reshape(B, oh * ow, H)       # rows are (b, oy, ox)
    return jnp.transpose(out, (1, 0, 2))              # (oh*ow, B, H)


# ----------------------------------------------------------------------------
# Consolidated visu + text projection (one launch, shared row-tiled grid)
# ----------------------------------------------------------------------------
def _dual_proj_kernel(xv_ref, wv_ref, bv_ref, xt_ref, wt_ref, bt_ref,
                      ov_ref, ot_ref):
    ov_ref[...] = jnp.dot(xv_ref[...], wv_ref[...],
                          preferred_element_type=jnp.float32) + bv_ref[...]
    ot_ref[...] = jnp.dot(xt_ref[...], wt_ref[...],
                          preferred_element_type=jnp.float32) + bt_ref[...]


def pallas_dual_projection(xv, wv, bv, xt, wt, bt, *, tm=256,
                           compute_dtype=jnp.bfloat16):
    """visu_proj and text_proj in a single pallas_call.  Both inputs are
    row-tiled over a shared 'parallel' grid (>= 2 steps when rows allow)."""
    Mv, Kv = xv.shape
    Mt, Kt = xt.shape
    N = wv.shape[1]
    Np = _round_up(N, 128)                            # lane-dense stores

    Mvp = _round_up(Mv, 16)
    tmv = _pick_row_tile(Mvp, tm)
    T = Mvp // tmv
    tmt = _round_up(max(1, pl.cdiv(Mt, T)), 16)
    Mtp = tmt * T

    xv = _pad_to(xv, (Mvp, Kv)).astype(compute_dtype)
    xt = _pad_to(xt, (Mtp, Kt)).astype(compute_dtype)
    wv = _pad_to(wv, (Kv, Np)).astype(compute_dtype)
    wt = _pad_to(wt, (Kt, Np)).astype(compute_dtype)
    bv = _pad_to(bv, (Np,)).reshape(1, Np).astype(jnp.float32)
    bt = _pad_to(bt, (Np,)).reshape(1, Np).astype(jnp.float32)

    block_bytes = ((tmv * Kv + Kv * Np + tmt * Kt + Kt * Np) * 2
                   + (tmv + tmt) * Np * 4 + 2 * Np * 4)
    cost = pl.CostEstimate(
        flops=2 * (Mvp * Kv + Mtp * Kt) * Np,
        transcendentals=0,
        bytes_accessed=(Mvp * Kv + Kv * Np + Mtp * Kt + Kt * Np) * 2
        + (Mvp + Mtp) * Np * 4)

    ov, ot = pl.pallas_call(
        _dual_proj_kernel,
        out_shape=(jax.ShapeDtypeStruct((Mvp, Np), jnp.float32),
                   jax.ShapeDtypeStruct((Mtp, Np), jnp.float32)),
        grid=(T,),
        in_specs=[
            pl.BlockSpec((tmv, Kv), lambda i: (i, 0)),
            pl.BlockSpec((Kv, Np), lambda i: (0, 0)),
            pl.BlockSpec((1, Np), lambda i: (0, 0)),
            pl.BlockSpec((tmt, Kt), lambda i: (i, 0)),
            pl.BlockSpec((Kt, Np), lambda i: (0, 0)),
            pl.BlockSpec((1, Np), lambda i: (0, 0)),
        ],
        out_specs=(pl.BlockSpec((tmv, Np), lambda i: (i, 0)),
                   pl.BlockSpec((tmt, Np), lambda i: (i, 0))),
        compiler_params=pltpu.CompilerParams(
            dimension_semantics=("parallel",),
            vmem_limit_bytes=_vmem_limit(block_bytes)),
        cost_estimate=cost,
    )(xv, wv, bv, xt, wt, bt)
    return ov[:Mv, :N], ot[:Mt, :N]


# ----------------------------------------------------------------------------
# bbox head: MLP(hidden, hidden, 4, 3).sigmoid()  (tiny, single fused launch)
# ----------------------------------------------------------------------------
def _bbox_mlp_kernel(x_ref, w1_ref, b1_ref, w2_ref, b2_ref, w3_ref, b3_ref,
                     o_ref):
    h = jnp.dot(x_ref[...], w1_ref[...],
                preferred_element_type=jnp.float32) + b1_ref[...]
    h = jnp.maximum(h, 0.0)
    h = jnp.dot(h, w2_ref[...],
                preferred_element_type=jnp.float32) + b2_ref[...]
    h = jnp.maximum(h, 0.0)
    y = jnp.dot(h, w3_ref[...],
                preferred_element_type=jnp.float32) + b3_ref[...]
    o_ref[...] = jax.nn.sigmoid(y)


def pallas_bbox_mlp_sigmoid(x, w1, b1, w2, b2, w3, b3):
    """Fused 3-layer MLP + sigmoid.  Tiny head; all widths lane-padded to a
    multiple of 128 so every store/intermediate is lane-dense; kept in f32."""
    M, K = x.shape
    H1, H2, NO = w1.shape[1], w2.shape[1], w3.shape[1]
    Mp = _round_up(M, 8)
    H1p, H2p, NOp = (_round_up(d, 128) for d in (H1, H2, NO))

    xp = _pad_to(x, (Mp, K)).astype(jnp.float32)
    w1p = _pad_to(w1, (K, H1p))
    w2p = _pad_to(w2, (H1p, H2p))
    w3p = _pad_to(w3, (H2p, NOp))
    b1p = _pad_to(b1, (H1p,)).reshape(1, H1p)
    b2p = _pad_to(b2, (H2p,)).reshape(1, H2p)
    b3p = _pad_to(b3, (NOp,)).reshape(1, NOp)

    block_bytes = 4 * (Mp * K + K * H1p + H1p * H2p + H2p * NOp
                       + Mp * NOp + H1p + H2p + NOp)
    out = pl.pallas_call(
        _bbox_mlp_kernel,
        out_shape=jax.ShapeDtypeStruct((Mp, NOp), jnp.float32),
        compiler_params=pltpu.CompilerParams(
            vmem_limit_bytes=_vmem_limit(block_bytes)),
    )(xp, w1p, b1p, w2p, b2p, w3p, b3p)
    return out[:M, :NO]


# ----------------------------------------------------------------------------
# Parameter construction (deterministic, synthetic — shapes match __init__)
# ----------------------------------------------------------------------------
def init_params(key, hidden_dim, visu_channels, text_channels, num_total):
    ks = jax.random.split(key, 16)
    f = lambda k, shape: (0.02 * jax.random.normal(k, shape)).astype(jnp.float32)

    params = {}
    # nn.Linear(visu_channels, hidden)  (PyTorch weight (out, in) -> transpose)
    params["visu_proj_w"] = f(ks[0], (hidden_dim, visu_channels)).T
    params["visu_proj_b"] = f(ks[1], (hidden_dim,))
    # nn.Linear(text_channels, hidden)
    params["text_proj_w"] = f(ks[2], (hidden_dim, text_channels)).T
    params["text_proj_b"] = f(ks[3], (hidden_dim,))
    # nn.Conv2d(320, hidden, kernel_size=1)   weight (hidden, 320, 1, 1)
    params["unet_conv1_w_raw"] = f(ks[4], (hidden_dim, 320))
    params["unet_conv1_b"] = f(ks[5], (hidden_dim,))
    # nn.Conv2d(hidden, hidden, kernel_size=8, stride=8)
    params["unet_conv2_w_raw"] = f(ks[6], (hidden_dim, hidden_dim, 8, 8))
    params["unet_conv2_b"] = f(ks[7], (hidden_dim,))
    # embeddings
    params["vl_pos_embed"] = f(ks[8], (num_total, hidden_dim))
    params["reg_token"] = f(ks[9], (1, hidden_dim))
    # bbox_embed = MLP(hidden, hidden, 4, 3)
    params["bbox_w1"] = f(ks[10], (hidden_dim, hidden_dim)).T
    params["bbox_b1"] = f(ks[11], (hidden_dim,))
    params["bbox_w2"] = f(ks[12], (hidden_dim, hidden_dim)).T
    params["bbox_b2"] = f(ks[13], (hidden_dim,))
    params["bbox_w3"] = f(ks[14], (4, hidden_dim)).T
    params["bbox_b3"] = f(ks[15], (4,))
    return params


# ----------------------------------------------------------------------------
# TransVG.forward (use_unet path), Pallas-backed
# ----------------------------------------------------------------------------
def transvg_forward(params, visu_src, visu_mask, text_src, text_mask,
                    unet_feat_nchw, hidden_dim):
    bs = text_src.shape[0]
    H = hidden_dim

    # TODO(synk): self.visumodel (DETR), self.textmodel (BERT) and the SD-UNet
    # + CLIP feature extractor are external backbones; their outputs
    # (visu_src, text_src, unet_feat_nchw) are inputs here.

    # visu_src = self.visu_proj(visu_src); text_src = self.text_proj(text_src)
    nv, _, cv = visu_src.shape
    nt, ct = text_src.shape[1], text_src.shape[2]
    visu_flat, text_flat = pallas_dual_projection(
        visu_src.reshape(nv * bs, cv),
        params["visu_proj_w"], params["visu_proj_b"],
        text_src.reshape(bs * nt, ct),
        params["text_proj_w"], params["text_proj_b"])
    visu_p = visu_flat.reshape(nv, bs, H)
    text_p = jnp.transpose(text_flat.reshape(bs, nt, H), (1, 0, 2))
    text_mask_flat = text_mask.reshape(bs, -1)

    # unet branch: x_c1 = unet_conv2(unet_conv1(feat)), fully fused kernel.
    x_c1 = pallas_unet_conv_fused(
        unet_feat_nchw,
        params["unet_conv1_w_raw"], params["unet_conv1_b"],
        params["unet_conv2_w_raw"], params["unet_conv2_b"])
    unet_mask = jnp.zeros((bs, x_c1.shape[0]), dtype=jnp.bool_)

    # reg token + concat
    tgt_src = jnp.broadcast_to(params["reg_token"][:, None, :], (1, bs, H))
    tgt_mask = jnp.zeros((bs, 1), dtype=jnp.bool_)

    vl_src = jnp.concatenate([tgt_src, text_p, visu_p, x_c1], axis=0)
    vl_mask = jnp.concatenate(
        [tgt_mask, text_mask_flat, visu_mask, unet_mask], axis=1)
    del vl_mask
    # TODO(synk): vl_pos = broadcast(vl_pos_embed) and vl_mask are consumed
    # only by the external self.vl_transformer (build_vl_transformer); the
    # transformer is stubbed by taking the reg-token slice of vl_src, so the
    # vl_pos broadcast (dead work under the stub) is skipped.
    vg_hs = vl_src[0]                                   # (bs, H)

    # pred_box = self.bbox_embed(vg_hs).sigmoid()
    pred_box = pallas_bbox_mlp_sigmoid(
        vg_hs,
        params["bbox_w1"], params["bbox_b1"],
        params["bbox_w2"], params["bbox_b2"],
        params["bbox_w3"], params["bbox_b3"])
    return pred_box


# ----------------------------------------------------------------------------
if __name__ == "__main__":
    key = jax.random.PRNGKey(0)
    bs = 2
    hidden_dim = 32            # args.vl_hidden_dim (small)
    visu_channels = 64         # visumodel.num_channels (small)
    text_channels = 48         # textmodel.num_channels (small)
    num_visu_token = 16        # (imsize / 32) ** 2 with imsize=128
    num_text_token = 8         # args.max_query_len (small)
    unet_hw = 16               # synthetic SD-UNet feature map spatial size
    n_unet_tok = (unet_hw // 8) ** 2
    num_total = 1 + num_text_token + num_visu_token + n_unet_tok

    params = init_params(key, hidden_dim, visu_channels, text_channels,
                         num_total)

    k1, k2, k3 = jax.random.split(jax.random.PRNGKey(0), 3)
    visu_src = jax.random.normal(k1, (num_visu_token, bs, visu_channels),
                                 dtype=jnp.float32)
    visu_mask = jnp.zeros((bs, num_visu_token), dtype=jnp.bool_)
    text_src = jax.random.normal(k2, (bs, num_text_token, text_channels),
                                 dtype=jnp.float32)
    text_mask = jnp.zeros((bs, num_text_token), dtype=jnp.bool_)
    unet_feat = jax.random.normal(k3, (bs, 320, unet_hw, unet_hw),
                                  dtype=jnp.float32)

    fwd = jax.jit(functools.partial(transvg_forward, hidden_dim=hidden_dim))
    pred_box = fwd(params, visu_src, visu_mask, text_src, text_mask, unet_feat)
    pred_box = jax.block_until_ready(pred_box)

    assert pred_box.shape == (bs, 4)
    assert bool(jnp.all(jnp.isfinite(pred_box)))
    assert bool(jnp.all((pred_box >= 0.0) & (pred_box <= 1.0)))
    print("KERNEL_OK")
</pallas_src>

<mosaic_0001>
module attributes {stable_mosaic.version = 11 : i64} {
  func.func @_bbox_mlp_kernel(%arg0: memref<8x32xf32, #tpu.memory_space<vmem>>, %arg1: memref<32x128xf32, #tpu.memory_space<vmem>>, %arg2: memref<1x128xf32, #tpu.memory_space<vmem>>, %arg3: memref<128x128xf32, #tpu.memory_space<vmem>>, %arg4: memref<1x128xf32, #tpu.memory_space<vmem>>, %arg5: memref<128x128xf32, #tpu.memory_space<vmem>>, %arg6: memref<1x128xf32, #tpu.memory_space<vmem>>, %arg7: memref<8x128xf32, #tpu.memory_space<vmem>>) attributes {dimension_semantics = [], scalar_prefetch = 0 : i64, scratch_operands = 0 : i64, tpu.core_type = #tpu.core_type<tc>} {
    %c0 = arith.constant 0 : index
    %c0_0 = arith.constant 0 : index
    %0 = vector.load %arg0[%c0, %c0_0] : memref<8x32xf32, #tpu.memory_space<vmem>>, vector<8x32xf32>
    %c0_1 = arith.constant 0 : index
    %c0_2 = arith.constant 0 : index
    %1 = vector.load %arg1[%c0_1, %c0_2] : memref<32x128xf32, #tpu.memory_space<vmem>>, vector<32x128xf32>
    %cst = arith.constant dense<0.000000e+00> : vector<8x128xf32>
    %2 = tpu.matmul %0, %1, %cst {dimension_numbers = #tpu.dot_dimension_numbers<[1], [0], [0], [1], [0, 0, 1, 1], [], []>} : vector<8x32xf32>, vector<32x128xf32>, vector<8x128xf32> -> vector<8x128xf32>
    %c0_3 = arith.constant 0 : index
    %c0_4 = arith.constant 0 : index
    %3 = vector.load %arg2[%c0_3, %c0_4] : memref<1x128xf32, #tpu.memory_space<vmem>>, vector<1x128xf32>
    %4 = vector.broadcast %3 : vector<1x128xf32> to vector<8x128xf32>
    %5 = arith.addf %2, %4 : vector<8x128xf32>
    %cst_5 = arith.constant 0.000000e+00 : f32
    %6 = vector.broadcast %cst_5 : f32 to vector<8x128xf32>
    %7 = arith.maximumf %5, %6 : vector<8x128xf32>
    %c0_6 = arith.constant 0 : index
    %c0_7 = arith.constant 0 : index
    %8 = vector.load %arg3[%c0_6, %c0_7] : memref<128x128xf32, #tpu.memory_space<vmem>>, vector<128x128xf32>
    %cst_8 = arith.constant dense<0.000000e+00> : vector<8x128xf32>
    %9 = tpu.matmul %7, %8, %cst_8 {dimension_numbers = #tpu.dot_dimension_numbers<[1], [0], [0], [1], [0, 0, 1, 1], [], []>} : vector<8x128xf32>, vector<128x128xf32>, vector<8x128xf32> -> vector<8x128xf32>
    %c0_9 = arith.constant 0 : index
    %c0_10 = arith.constant 0 : index
    %10 = vector.load %arg4[%c0_9, %c0_10] : memref<1x128xf32, #tpu.memory_space<vmem>>, vector<1x128xf32>
    %11 = vector.broadcast %10 : vector<1x128xf32> to vector<8x128xf32>
    %12 = arith.addf %9, %11 : vector<8x128xf32>
    %cst_11 = arith.constant 0.000000e+00 : f32
    %13 = vector.broadcast %cst_11 : f32 to vector<8x128xf32>
    %14 = arith.maximumf %12, %13 : vector<8x128xf32>
    %c0_12 = arith.constant 0 : index
    %c0_13 = arith.constant 0 : index
    %15 = vector.load %arg5[%c0_12, %c0_13] : memref<128x128xf32, #tpu.memory_space<vmem>>, vector<128x128xf32>
    %cst_14 = arith.constant dense<0.000000e+00> : vector<8x128xf32>
    %16 = tpu.matmul %14, %15, %cst_14 {dimension_numbers = #tpu.dot_dimension_numbers<[1], [0], [0], [1], [0, 0, 1, 1], [], []>} : vector<8x128xf32>, vector<128x128xf32>, vector<8x128xf32> -> vector<8x128xf32>
    %c0_15 = arith.constant 0 : index
    %c0_16 = arith.constant 0 : index
    %17 = vector.load %arg6[%c0_15, %c0_16] : memref<1x128xf32, #tpu.memory_space<vmem>>, vector<1x128xf32>
    %18 = vector.broadcast %17 : vector<1x128xf32> to vector<8x128xf32>
    %19 = arith.addf %16, %18 : vector<8x128xf32>
    %20 = arith.negf %19 : vector<8x128xf32>
    %21 = math.exp %20 : vector<8x128xf32>
    %cst_17 = arith.constant 1.000000e+00 : f32
    %22 = vector.broadcast %cst_17 : f32 to vector<8x128xf32>
    %23 = arith.addf %22, %21 : vector<8x128xf32>
    %24 = arith.divf %22, %23 : vector<8x128xf32>
    %c0_18 = arith.constant 0 : index
    %c0_19 = arith.constant 0 : index
    %25 = vector.load %arg7[%c0_18, %c0_19] : memref<8x128xf32, #tpu.memory_space<vmem>>, vector<8x128xf32>
    tpu.vector_store %arg7[%c0_18, %c0_19], %24 {strides = array<i32>} : memref<8x128xf32, #tpu.memory_space<vmem>>, vector<8x128xf32>,
    return
  }
}

</mosaic_0001>

<bundles_post_ra>
// kernel: transvg_forward.1
= control target key start
LH: loop header
LB: loop body
LE: loop exit
PB: predicated region body
PF: predicated region fallthrough
CT: control target
= control target key end

     0   :  { %v497_v0 = vmov 0.0|0.0   ;;  %vm498_vm0 = vmmov 0   ;;  %v499_v4 = vmov 0.0   ;;  %vm38_vm1 = vcmask 261120   ;;  %s684_s1 = inlined_call_operand.vmem [shape: f32[32,128], index: 1, kind: input, shape index: {}]   ;;  %s685_s3 = inlined_call_operand.vmem [shape: f32[128,128], index: 3, kind: input, shape index: {}]   ;;  %s686_s0 = inlined_call_operand.vmem [shape: f32[8,32], index: 0, kind: input, shape index: {}]   ;;  %s687_s5 = inlined_call_operand.vmem [shape: f32[128,128], index: 5, kind: input, shape index: {}]   ;;  %s688_s2 = inlined_call_operand.vmem [shape: f32[1,128], index: 2, kind: input, shape index: {}]   ;;  %s689_s4 = inlined_call_operand.vmem [shape: f32[1,128], index: 4, kind: input, shape index: {}]   ;;  %s690_s6 = inlined_call_operand.vmem [shape: f32[1,128], index: 6, kind: input, shape index: {}]   ;;  %s691_s7 = inlined_call_operand.vmem [shape: f32[8,128], index: 7, kind: output, shape index: {}]  }
   0x1   :  { %436 = vmatprep.subr.bf16.mxu0 %v497_v0  ;;  %v27_v1 = vld [vmem:[%s684_s1] sm:$0xff]  ;;  %v28_v2 = vld [vmem:[%s684_s1 + $0x8] sm:$0xff]  ;;  %v29_v3 = vld [vmem:[%s684_s1 + $0x10] sm:$0xff]  ;;  %363 = vmatprep.mubr.msk.f32.mxu0 %vm498_vm0, %v499_v4 }
   0x2   :  { %v437_v5 = vpack.c.bf16 %v28_v2, %v27_v1  ;;  %v30_v6 = vld [vmem:[%s684_s1 + $0x18] sm:$0xff]  ;;  %442 = vmatprep.subr.bf16.mxu1 %v497_v0  ;;  %v113_v7 = vld [vmem:[%s685_s3] sm:$0xff]  ;;  %398 = vmatprep.mubr.msk.f32.mxu1 %vm498_vm0, %v499_v4  ;;  %v114_v8 = vld [vmem:[%s685_s3 + $0x8] sm:$0xff] }
   0x3   :  { %v115_v9 = vld [vmem:[%s685_s3 + $0x10] sm:$0xff]  ;;  %v116_v10 = vld [vmem:[%s685_s3 + $0x18] sm:$0xff]  ;;  %v440_v11 = vpack.c.bf16 %v30_v6, %v29_v3  ;;  %v443_v12 = vpack.c.bf16 %v114_v8, %v113_v7  ;;  %v117_v14 = vld [vmem:[%s685_s3 + $0x20] sm:$0xff] }
   0x4   :  { %438 = vmatpush3.bf16.msra.mxu0 %v437_v5  ;;  %v446_v13 = vpack.c.bf16 %v116_v10, %v115_v9  ;;  %v118_v15 = vld [vmem:[%s685_s3 + $0x28] sm:$0xff]  ;;  %v26_v16 = vld [vmem:[%s686_s0] sm:$0xff]  ;;  %v119_v18 = vld [vmem:[%s685_s3 + $0x30] sm:$0xff] }
   0x5   :  { %439 = vmatprep.subr.bf16.mxu0 %v497_v0  ;;  %444 = vmatpush3.bf16.msra.mxu1 %v443_v12  ;;  %v449_v17 = vpack.c.bf16 %v118_v15, %v117_v14  ;;  %v120_v19 = vld [vmem:[%s685_s3 + $0x38] sm:$0xff]  ;;  %v121_v21 = vld [vmem:[%s685_s3 + $0x40] sm:$0xff]  ;;  %v122_v22 = vld [vmem:[%s685_s3 + $0x48] sm:$0xff] }
   0x6   :  { %445 = vmatprep.subr.bf16.mxu1 %v497_v0  ;;  %v452_v20 = vpack.c.bf16 %v120_v19, %v119_v18  ;;  %v455_v23 = vpack.c.bf16 %v122_v22, %v121_v21  ;;  %v123_v24 = vld [vmem:[%s685_s3 + $0x50] sm:$0xff]  ;;  %v124_v25 = vld [vmem:[%s685_s3 + $0x58] sm:$0xff]  ;;  %v125_v27 = vld [vmem:[%s685_s3 + $0x60] sm:$0xff] }
   0x7   :  { %v458_v26 = vpack.c.bf16 %v124_v25, %v123_v24  ;;  %v126_v28 = vld [vmem:[%s685_s3 + $0x68] sm:$0xff]  ;;  %v127_v30 = vld [vmem:[%s685_s3 + $0x70] sm:$0xff]  ;;  %v128_v31 = vld [vmem:[%s685_s3 + $0x78] sm:$0xff] }
   0x8   :  { %441 = vmatpush3.bf16.msra.mxu0 %v440_v11  ;;  %v461_v29 = vpack.c.bf16 %v126_v28, %v125_v27  ;;  %v464_v32 = vpack.c.bf16 %v128_v31, %v127_v30  ;;  %v207_v33 = vld [vmem:[%s687_s5] sm:$0xff]  ;;  %v208_v34 = vld [vmem:[%s687_s5 + $0x8] sm:$0xff]  ;;  %v209_v35 = vld [vmem:[%s687_s5 + $0x10] sm:$0xff] }
   0x9   :  { %466 = vmatprep.subr.bf16.mxu0 %v497_v0  ;;  %447 = vmatpush3.bf16.msra.mxu1 %v446_v13  ;;  %v467_v36 = vpack.c.bf16 %v208_v34, %v207_v33  ;;  %v210_v37 = vld [vmem:[%s687_s5 + $0x18] sm:$0xff]  ;;  %v211_v39 = vld [vmem:[%s687_s5 + $0x20] sm:$0xff]  ;;  %v212_v40 = vld [vmem:[%s687_s5 + $0x28] sm:$0xff] }
   0xa   :  { %448 = vmatprep.subr.bf16.mxu1 %v497_v0  ;;  %v470_v38 = vpack.c.bf16 %v210_v37, %v209_v35  ;;  %v473_v41 = vpack.c.bf16 %v212_v40, %v211_v39  ;;  %v213_v42 = vld [vmem:[%s687_s5 + $0x30] sm:$0xff]  ;;  %v214_v43 = vld [vmem:[%s687_s5 + $0x38] sm:$0xff]  ;;  %v215_v45 = vld [vmem:[%s687_s5 + $0x40] sm:$0xff] }
   0xb   :  { %364 = vmatmul.mubr.msk.f32.vlgmr.msra.gmra.mrb[0].mxu0 %vm38_vm1, %v26_v16  ;;  %v476_v44 = vpack.c.bf16 %v214_v43, %v213_v42  ;;  %v216_v46 = vld [vmem:[%s687_s5 + $0x48] sm:$0xff]  ;;  %v217_v48 = vld [vmem:[%s687_s5 + $0x50] sm:$0xff]  ;;  %v218_v49 = vld [vmem:[%s687_s5 + $0x58] sm:$0xff] }
   0xc   :  { %433 = vmatprep.mubr.msk.f32.mxu0 %vm498_vm0, %v499_v4  ;;  %468 = vmatpush3.bf16.msra.mxu0 %v467_v36  ;;  %v479_v47 = vpack.c.bf16 %v216_v46, %v215_v45  ;;  %v482_v50 = vpack.c.bf16 %v218_v49, %v217_v48  ;;  %v219_v51 = vld [vmem:[%s687_s5 + $0x60] sm:$0xff]  ;;  %v220_v52 = vld [vmem:[%s687_s5 + $0x68] sm:$0xff]  ;;  %v221_v59 = vld [vmem:[%s687_s5 + $0x70] sm:$0xff] }
   0xd   :  { %450 = vmatpush3.bf16.msra.mxu1 %v449_v17  ;;  %469 = vmatprep.subr.bf16.mxu0 %v497_v0  ;;  %v485_v53 = vpack.c.bf16 %v220_v52, %v219_v51  ;;  %v311_v54 = vld [vmem:[%s688_s2] ss:$0 sm:$0xff]  ;;  %v222_v60 = vld [vmem:[%s687_s5 + $0x78] sm:$0xff] }
   0xe   :  { %451 = vmatprep.subr.bf16.mxu1 %v497_v0  ;;  %v488_v61 = vpack.c.bf16 %v222_v60, %v221_v59  ;;  %v313_v62 = vld [vmem:[%s689_s4] ss:$0 sm:$0xff] }
   0xf   :  { %v314_v3 = vld [vmem:[%s690_s6] ss:$0 sm:$0xff] }
  0x10   :  { %471 = vmatpush3.bf16.msra.mxu0 %v470_v38 }
  0x11   :  { %453 = vmatpush3.bf16.msra.mxu1 %v452_v20  ;;  %472 = vmatprep.subr.bf16.mxu0 %v497_v0 }
  0x12   :  { %454 = vmatprep.subr.bf16.mxu1 %v497_v0 }
  0x14   :  { %474 = vmatpush3.bf16.msra.mxu0 %v473_v41 }
  0x15   :  { %456 = vmatpush3.bf16.msra.mxu1 %v455_v23  ;;  %475 = vmatprep.subr.bf16.mxu0 %v497_v0 }
  0x16   :  { %457 = vmatprep.subr.bf16.mxu1 %v497_v0 }
  0x18   :  { %477 = vmatpush3.bf16.msra.mxu0 %v476_v44 }
  0x19   :  { %459 = vmatpush3.bf16.msra.mxu1 %v458_v26  ;;  %478 = vmatprep.subr.bf16.mxu0 %v497_v0 }
  0x1a   :  { %460 = vmatprep.subr.bf16.mxu1 %v497_v0 }
  0x1c   :  { %480 = vmatpush3.bf16.msra.mxu0 %v479_v47 }
  0x1d   :  { %462 = vmatpush3.bf16.msra.mxu1 %v461_v29  ;;  %481 = vmatprep.subr.bf16.mxu0 %v497_v0 }
  0x1e   :  { %463 = vmatprep.subr.bf16.mxu1 %v497_v0 }
  0x20   :  { %483 = vmatpush3.bf16.msra.mxu0 %v482_v50 }
  0x21   :  { %465 = vmatpush3.bf16.msra.mxu1 %v464_v32  ;;  %484 = vmatprep.subr.bf16.mxu0 %v497_v0 }
  0x24   :  { %486 = vmatpush3.bf16.msra.mxu0 %v485_v53 }
  0x25   :  { %487 = vmatprep.subr.bf16.mxu0 %v497_v0 }
  0x28   :  { %489 = vmatpush3.bf16.msra.mxu0 %v488_v61 }
  0xde   :  { %v108_v55 = vpop.f32.mrb[0].mxu0 }
  0xdf   :  { %v109_v56 = vadd.f32 %v311_v54, %v108_v55  ;;  %v365_v57 = vpop.f32.mrb[1].mxu0 }
  0xe1   :  { %v112_v58 = vmax.f32 %v109_v56, 0.0 }
  0xe3   :  { %399 = vmatmul.mubr.f32.vlgmr.msra.gmra.mrb[0].mxu1 %v112_v58 }
 0x1b6   :  { %v202_v63 = vpop.f32.mrb[0].mxu1 }
 0x1b7   :  { %v203_v0 = vadd.f32 %v313_v62, %v202_v63  ;;  %v400_v1 = vpop.f32.mrb[1].mxu1 }
 0x1b9   :  { %v206_v2 = vmax.f32 %v203_v0, 0.0 }
 0x1bb   :  { %434 = vmatmul.mubr.f32.vlgmr.msra.gmra.mrb[2].mxu0 %v206_v2 }
 0x28e   :  { %v296_v4 = vpop.f32.mrb[2].mxu0 }
 0x28f   :  { %v297_v5 = vadd.f32 %v314_v3, %v296_v4  ;;  %v435_v6 = vpop.f32.mrb[3].mxu0 }
 0x291   :  { %v315_v7 = vmul.f32 -1.442695, %v297_v5 }
 0x293   :  { %493 = vpow2.f32 %v315_v7 }
 0x29d   :  { %v494_v8 = vpop.eup %493 }
 0x29e   :  { %v303_v9 = vadd.f32 1.0, %v494_v8 }
 0x2a0   :  { %495 = vrcp.f32 %v303_v9 }
 0x2aa   :  { %v496_v10 = vpop.eup %495 }
 0x2ab   :  { %306 = vst [vmem:[%s691_s7] sm:$0xff] %v496_v10 }

</bundles_post_ra>
